<compile_context>
chip_gen: v5e
topology: v5e:2x2
jax: 0.10.0
libtpu: 0.0.40
codegen_flags: <defaults>
</compile_context>

<pallas_src>
import numpy as np
import jax
import jax.numpy as jnp
from jax import lax
from jax.experimental import pallas as pl
from jax.experimental.pallas import tpu as pltpu

PAD_ID = 0  # self.input_vocab['<PAD>']


# ---------------------------------------------------------------------------
# Encoder: single-layer GRU over the whole source sequence, one kernel.
# Input-side gate matmuls are hoisted out of the serial recurrence.
# ---------------------------------------------------------------------------
def encoder_gru_kernel(emb_ref, h0_ref, wih_ref, whh_ref, bih_ref, bhh_ref,
                       enc_out_ref, h_final_ref,
                       gir_sc, giz_sc, gin_sc):
    # emb_ref: [S, B, E], h0_ref: [B, H], wih_ref: [3, E, H], whh_ref: [3, H, H]
    S, B, E = emb_ref.shape
    H = h0_ref.shape[1]

    # ---- hoist input-side matmuls: one tall matmul per gate over all timesteps ----
    emb_flat = emb_ref[...].reshape(S * B, E)
    gir_sc[...] = (jnp.dot(emb_flat, wih_ref[0], preferred_element_type=jnp.float32)
                   + bih_ref[0]).reshape(S, B, H)
    giz_sc[...] = (jnp.dot(emb_flat, wih_ref[1], preferred_element_type=jnp.float32)
                   + bih_ref[1]).reshape(S, B, H)
    gin_sc[...] = (jnp.dot(emb_flat, wih_ref[2], preferred_element_type=jnp.float32)
                   + bih_ref[2]).reshape(S, B, H)

    def step(t, h):
        gh_r = jnp.dot(h, whh_ref[0], preferred_element_type=jnp.float32) + bhh_ref[0]
        gh_z = jnp.dot(h, whh_ref[1], preferred_element_type=jnp.float32) + bhh_ref[1]
        gh_n = jnp.dot(h, whh_ref[2], preferred_element_type=jnp.float32) + bhh_ref[2]
        r = jax.nn.sigmoid(gir_sc[t] + gh_r)
        z = jax.nn.sigmoid(giz_sc[t] + gh_z)
        n = jnp.tanh(gin_sc[t] + r * gh_n)
        h_new = (1.0 - z) * n + z * h                     # PyTorch GRU update rule
        enc_out_ref[t] = h_new
        return h_new

    h_final_ref[...] = lax.fori_loop(0, S, step, h0_ref[...])


def run_encoder(emb_src, h0, w_ih, w_hh, b_ih, b_hh):
    S, B, _ = emb_src.shape
    H = h0.shape[1]
    vmem = pl.BlockSpec(memory_space=pltpu.MemorySpace.VMEM)
    return pl.pallas_call(
        encoder_gru_kernel,
        out_shape=(jax.ShapeDtypeStruct((S, B, H), jnp.float32),
                   jax.ShapeDtypeStruct((B, H), jnp.float32)),
        in_specs=[vmem] * 6,
        out_specs=(vmem, vmem),
        scratch_shapes=[pltpu.VMEM((S, B, H), jnp.float32)] * 3,
    )(emb_src, h0, w_ih, w_hh, b_ih, b_hh)


# ---------------------------------------------------------------------------
# Fused decoder: the WHOLE `for t in range(1, trg_len)` loop in one kernel.
# Attention (masked softmax) + context + GRU cell + fc_out + argmax +
# teacher-forcing selection + decoder-embedding lookup, with all weights and
# the encoder outputs resident in VMEM for the entire decode.
# ---------------------------------------------------------------------------
def fused_decoder_kernel(tf_ref, forced_ref, enc_ref, mask_ref, h0_ref,
                         dec_emb_ref, wah_ref, wae_ref, va_ref,
                         wie_ref, wic_ref, whh_ref, bih_ref, bhh_ref,
                         fcwh_ref, fcwc_ref, fcwe_ref, fcb_ref,
                         out_ref, hfin_ref):
    # tf_ref: [T] int32 (SMEM), forced_ref: [T, B, V] one-hot teacher tokens,
    # enc_ref: [B, S, H], mask_ref: [B, S], h0_ref: [B, H], out_ref: [T, B, V]
    T = out_ref.shape[0]
    B, S, H = enc_ref.shape
    V = out_ref.shape[2]
    Ha = wah_ref.shape[1]

    enc = enc_ref[...]                                     # [B, S, H]
    mask = mask_ref[...]                                   # [B, S]
    va = va_ref[...]                                       # [1, Ha]
    neg = jnp.float32(-1e10)

    # ---- loop-invariant: encoder half of the Bahdanau energy, computed ONCE ----
    enc_proj = jnp.dot(enc.reshape(B * S, H), wae_ref[...],
                       preferred_element_type=jnp.float32).reshape(B, S, Ha)

    # loop-invariant index grid for argmax / one-hot (hoisted out of the loop)
    ids_f = lax.broadcasted_iota(jnp.int32, (B, V), 1).astype(jnp.float32)

    # outputs[:, 0] stays zero, as in torch.zeros(batch, trg_len, vocab)
    out_ref[...] = jnp.zeros_like(out_ref)

    def step(t, carry):
        h, inp_1h = carry                                  # [B,H], [B,V]

        # decoder embedding lookup as one-hot @ emb (MXU-friendly, in-kernel)
        emb = jnp.dot(inp_1h, dec_emb_ref[...], preferred_element_type=jnp.float32)  # [B,E]

        # ---- Bahdanau attention, [B, S] layout (softmax axis on lanes) ----
        h_proj = jnp.dot(h, wah_ref[...], preferred_element_type=jnp.float32)  # [B,Ha]
        energy = jnp.tanh(enc_proj + h_proj[:, None, :])                        # [B,S,Ha]
        scores = jnp.sum(energy * va, axis=-1)                                  # [B,S]
        scores = jnp.where(mask > 0.0, scores, neg)         # masked_fill(mask==0, -1e10)
        scores = scores - jnp.max(scores, axis=-1, keepdims=True)
        ex = jnp.exp(scores)
        attn = ex / jnp.sum(ex, axis=-1, keepdims=True)                          # [B,S]

        # context = attn @ enc  (batched MXU matmul instead of VPU broadcast+reduce)
        ctx = jnp.einsum('bqs,bsh->bqh', attn[:, None, :], enc,
                         preferred_element_type=jnp.float32)[:, 0, :]            # [B,H]

        # ---- GRU cell on [embedded ; context] via split matmuls (no concat) ----
        def gates(g):
            gi = (jnp.dot(emb, wie_ref[g], preferred_element_type=jnp.float32)
                  + jnp.dot(ctx, wic_ref[g], preferred_element_type=jnp.float32)
                  + bih_ref[g])
            gh = jnp.dot(h, whh_ref[g], preferred_element_type=jnp.float32) + bhh_ref[g]
            return gi, gh

        gi_r, gh_r = gates(0)
        gi_z, gh_z = gates(1)
        gi_n, gh_n = gates(2)
        r = jax.nn.sigmoid(gi_r + gh_r)
        z = jax.nn.sigmoid(gi_z + gh_z)
        n = jnp.tanh(gi_n + r * gh_n)
        h_new = (1.0 - z) * n + z * h                                             # [B,H]

        # ---- output projection fc([h_new ; ctx ; emb]) via split matmuls ----
        logits = (jnp.dot(h_new, fcwh_ref[...], preferred_element_type=jnp.float32)
                  + jnp.dot(ctx, fcwc_ref[...], preferred_element_type=jnp.float32)
                  + jnp.dot(emb, fcwe_ref[...], preferred_element_type=jnp.float32)
                  + fcb_ref[...])                                                 # [B,V]
        out_ref[t] = logits

        # ---- greedy argmax (first maximal index, like torch.argmax) ----
        maxv = jnp.max(logits, axis=-1, keepdims=True)                            # [B,1]
        cand = jnp.where(logits == maxv, ids_f, jnp.float32(V))
        top1 = jnp.min(cand, axis=-1, keepdims=True)                              # [B,1]
        top1_1h = (ids_f == top1).astype(jnp.float32)                             # [B,V]

        # ---- teacher-forcing selection (per-step flag from SMEM) ----
        tf_f = (tf_ref[t] > 0).astype(jnp.float32)
        next_1h = tf_f * forced_ref[t] + (1.0 - tf_f) * top1_1h
        return h_new, next_1h

    init = (h0_ref[...], forced_ref[0])                    # input = trg[:, 0]
    h_fin, _ = lax.fori_loop(1, T, step, init)
    hfin_ref[...] = h_fin


def run_fused_decoder(tf_flags, forced_1h, enc_bsh, mask_bs, h0, p):
    T, B, V = forced_1h.shape
    H = h0.shape[1]
    vmem = pl.BlockSpec(memory_space=pltpu.MemorySpace.VMEM)
    smem = pl.BlockSpec(memory_space=pltpu.MemorySpace.SMEM)
    return pl.pallas_call(
        fused_decoder_kernel,
        out_shape=(jax.ShapeDtypeStruct((T, B, V), jnp.float32),
                   jax.ShapeDtypeStruct((B, H), jnp.float32)),
        in_specs=[smem] + [vmem] * 17,
        out_specs=(vmem, vmem),
    )(tf_flags, forced_1h, enc_bsh, mask_bs, h0,
      p["dec_emb"], p["attn_wh"], p["attn_wenc"], p["attn_v"],
      p["dec_wie"], p["dec_wic"], p["dec_whh"], p["dec_bih"], p["dec_bhh"],
      p["fc_wh"], p["fc_wc"], p["fc_we"], p["fc_b"])


# ---------------------------------------------------------------------------
# Seq2Seq.forward equivalent.
# ---------------------------------------------------------------------------
def seq2seq_forward(params, src, trg, teacher_forcing_ratio=0.5, rng_seed=0):
    B, S = src.shape
    T = trg.shape[1]
    H = params["enc_whh"].shape[1]
    V_out = params["dec_emb"].shape[0]

    # encoder (embedding lookup stays in JAX glue, like nn.Embedding outside the cell)
    emb_src = jnp.take(params["enc_emb"], src, axis=0)                     # [B, S, E]
    emb_src = jnp.transpose(emb_src, (1, 0, 2)).astype(jnp.float32)        # [S, B, E]
    h0 = jnp.zeros((B, H), jnp.float32)
    enc_out, hidden = run_encoder(emb_src, h0,
                                  params["enc_wih"], params["enc_whh"],
                                  params["enc_bih"], params["enc_bhh"])

    # decoder-side layouts: enc [B,S,H], mask [B,S] (create_mask(src): src != <PAD>)
    enc_bsh = jnp.transpose(enc_out, (1, 0, 2))                            # [B, S, H]
    mask_bs = (src != PAD_ID).astype(jnp.float32)                          # [B, S]

    # teacher-forcing coin flips (deterministic stand-in for np.random.rand per step)
    rng = np.random.RandomState(rng_seed)
    tf_np = np.zeros((T,), np.int32)
    for t in range(1, T):
        tf_np[t] = np.int32(rng.rand() < teacher_forcing_ratio)
    tf_flags = jnp.asarray(tf_np)

    # teacher tokens as one-hots, time-major: forced_1h[t] = one_hot(trg[:, t])
    forced_1h = jax.nn.one_hot(trg.T, V_out, dtype=jnp.float32)            # [T, B, V]

    out_tbv, _hfin = run_fused_decoder(tf_flags, forced_1h, enc_bsh, mask_bs,
                                       hidden, params)
    return jnp.transpose(out_tbv, (1, 0, 2))                               # [B, T, V_out]


# ---------------------------------------------------------------------------
# Deterministic parameter init.  GRU gate weights are stored as three separate
# [., H] blocks (stacked on a leading axis) so gate math never slices at a
# 32-lane boundary; concat-style weights are pre-split for split matmuls.
# ---------------------------------------------------------------------------
def init_params(key, V_in, V_out, E, H, Ha):
    ks = jax.random.split(key, 16)
    s = 0.1
    f32 = jnp.float32

    def rnd(k, shape):
        return jax.random.normal(k, shape, f32) * s

    return {
        "enc_emb":   rnd(ks[0], (V_in, E)),
        "enc_wih":   rnd(ks[1], (3, E, H)),      # gates r, z, n
        "enc_whh":   rnd(ks[2], (3, H, H)),
        "enc_bih":   jnp.zeros((3, 1, H), f32),
        "enc_bhh":   jnp.zeros((3, 1, H), f32),
        "dec_emb":   rnd(ks[3], (V_out, E)),
        "attn_wh":   rnd(ks[4], (H, Ha)),        # Wa applied to hidden
        "attn_wenc": rnd(ks[5], (H, Ha)),        # Wa applied to encoder outputs
        "attn_v":    rnd(ks[6], (1, Ha)),
        "dec_wie":   rnd(ks[7], (3, E, H)),      # input-side (embedding part)
        "dec_wic":   rnd(ks[8], (3, H, H)),      # input-side (context part)
        "dec_whh":   rnd(ks[9], (3, H, H)),
        "dec_bih":   jnp.zeros((3, 1, H), f32),
        "dec_bhh":   jnp.zeros((3, 1, H), f32),
        "fc_wh":     rnd(ks[10], (H, V_out)),    # fc_out split: hidden / context / emb
        "fc_wc":     rnd(ks[11], (H, V_out)),
        "fc_we":     rnd(ks[12], (E, V_out)),
        "fc_b":      jnp.zeros((1, V_out), f32),
    }


if __name__ == "__main__":
    B, S, T = 2, 8, 6
    V_in, V_out = 24, 20
    E, H, Ha = 32, 32, 32

    key = jax.random.PRNGKey(0)
    pkey, skey, tkey = jax.random.split(key, 3)
    params = init_params(pkey, V_in, V_out, E, H, Ha)

    src = jax.random.randint(skey, (B, S), 1, V_in, dtype=jnp.int32)
    src = src.at[1, -2:].set(PAD_ID)            # exercise the <PAD> mask
    trg = jax.random.randint(tkey, (B, T), 1, V_out, dtype=jnp.int32)

    out = seq2seq_forward(params, src, trg, teacher_forcing_ratio=0.5)
    out = jax.block_until_ready(out)
    assert out.shape == (B, T, V_out)
    assert bool(jnp.all(jnp.isfinite(out)))
    assert bool(jnp.all(out[:, 0, :] == 0.0))   # outputs[:, 0] untouched, as in PyTorch
    print("KERNEL_OK")
</pallas_src>

<mosaic_0001>
module attributes {stable_mosaic.version = 11 : i64} {
  func.func @encoder_gru_kernel(%arg0: memref<8x2x32xf32, #tpu.memory_space<vmem>>, %arg1: memref<2x32xf32, #tpu.memory_space<vmem>>, %arg2: memref<3x32x32xf32, #tpu.memory_space<vmem>>, %arg3: memref<3x32x32xf32, #tpu.memory_space<vmem>>, %arg4: memref<3x1x32xf32, #tpu.memory_space<vmem>>, %arg5: memref<3x1x32xf32, #tpu.memory_space<vmem>>, %arg6: memref<8x2x32xf32, #tpu.memory_space<vmem>>, %arg7: memref<2x32xf32, #tpu.memory_space<vmem>>, %arg8: memref<8x2x32xf32, #tpu.memory_space<vmem>>, %arg9: memref<8x2x32xf32, #tpu.memory_space<vmem>>, %arg10: memref<8x2x32xf32, #tpu.memory_space<vmem>>) attributes {dimension_semantics = [], scalar_prefetch = 0 : i64, scratch_operands = 3 : i64, tpu.core_type = #tpu.core_type<tc>} {
    %c0 = arith.constant 0 : index
    %c0_0 = arith.constant 0 : index
    %c0_1 = arith.constant 0 : index
    %0 = vector.load %arg0[%c0, %c0_0, %c0_1] : memref<8x2x32xf32, #tpu.memory_space<vmem>>, vector<8x2x32xf32>
    %1 = vector.shape_cast %0 : vector<8x2x32xf32> to vector<16x32xf32>
    %c0_2 = arith.constant 0 : index
    %c0_3 = arith.constant 0 : index
    %c0_4 = arith.constant 0 : index
    %2 = vector.load %arg2[%c0_2, %c0_3, %c0_4] : memref<3x32x32xf32, #tpu.memory_space<vmem>>, vector<1x32x32xf32>
    %3 = vector.shape_cast %2 : vector<1x32x32xf32> to vector<32x32xf32>
    %cst = arith.constant dense<0.000000e+00> : vector<16x32xf32>
    %4 = tpu.matmul %1, %3, %cst {dimension_numbers = #tpu.dot_dimension_numbers<[1], [0], [0], [1], [0, 0, 1, 1], [], []>} : vector<16x32xf32>, vector<32x32xf32>, vector<16x32xf32> -> vector<16x32xf32>
    %c0_5 = arith.constant 0 : index
    %c0_6 = arith.constant 0 : index
    %c0_7 = arith.constant 0 : index
    %5 = vector.load %arg4[%c0_5, %c0_6, %c0_7] : memref<3x1x32xf32, #tpu.memory_space<vmem>>, vector<1x1x32xf32>
    %6 = vector.shape_cast %5 : vector<1x1x32xf32> to vector<1x32xf32>
    %7 = vector.broadcast %6 : vector<1x32xf32> to vector<16x32xf32>
    %8 = arith.addf %4, %7 : vector<16x32xf32>
    %9 = vector.shape_cast %8 : vector<16x32xf32> to vector<8x2x32xf32>
    %c0_8 = arith.constant 0 : index
    %c0_9 = arith.constant 0 : index
    %c0_10 = arith.constant 0 : index
    %10 = vector.load %arg8[%c0_8, %c0_9, %c0_10] : memref<8x2x32xf32, #tpu.memory_space<vmem>>, vector<8x2x32xf32>
    tpu.vector_store %arg8[%c0_8, %c0_9, %c0_10], %9 {strides = array<i32>} : memref<8x2x32xf32, #tpu.memory_space<vmem>>, vector<8x2x32xf32>,
    %c1 = arith.constant 1 : index
    %c0_11 = arith.constant 0 : index
    %c0_12 = arith.constant 0 : index
    %11 = vector.load %arg2[%c1, %c0_11, %c0_12] : memref<3x32x32xf32, #tpu.memory_space<vmem>>, vector<1x32x32xf32>
    %12 = vector.shape_cast %11 : vector<1x32x32xf32> to vector<32x32xf32>
    %cst_13 = arith.constant dense<0.000000e+00> : vector<16x32xf32>
    %13 = tpu.matmul %1, %12, %cst_13 {dimension_numbers = #tpu.dot_dimension_numbers<[1], [0], [0], [1], [0, 0, 1, 1], [], []>} : vector<16x32xf32>, vector<32x32xf32>, vector<16x32xf32> -> vector<16x32xf32>
    %c1_14 = arith.constant 1 : index
    %c0_15 = arith.constant 0 : index
    %c0_16 = arith.constant 0 : index
    %14 = vector.load %arg4[%c1_14, %c0_15, %c0_16] : memref<3x1x32xf32, #tpu.memory_space<vmem>>, vector<1x1x32xf32>
    %15 = vector.shape_cast %14 : vector<1x1x32xf32> to vector<1x32xf32>
    %16 = vector.broadcast %15 : vector<1x32xf32> to vector<16x32xf32>
    %17 = arith.addf %13, %16 : vector<16x32xf32>
    %18 = vector.shape_cast %17 : vector<16x32xf32> to vector<8x2x32xf32>
    %c0_17 = arith.constant 0 : index
    %c0_18 = arith.constant 0 : index
    %c0_19 = arith.constant 0 : index
    %19 = vector.load %arg9[%c0_17, %c0_18, %c0_19] : memref<8x2x32xf32, #tpu.memory_space<vmem>>, vector<8x2x32xf32>
    tpu.vector_store %arg9[%c0_17, %c0_18, %c0_19], %18 {strides = array<i32>} : memref<8x2x32xf32, #tpu.memory_space<vmem>>, vector<8x2x32xf32>,
    %c2 = arith.constant 2 : index
    %c0_20 = arith.constant 0 : index
    %c0_21 = arith.constant 0 : index
    %20 = vector.load %arg2[%c2, %c0_20, %c0_21] : memref<3x32x32xf32, #tpu.memory_space<vmem>>, vector<1x32x32xf32>
    %21 = vector.shape_cast %20 : vector<1x32x32xf32> to vector<32x32xf32>
    %cst_22 = arith.constant dense<0.000000e+00> : vector<16x32xf32>
    %22 = tpu.matmul %1, %21, %cst_22 {dimension_numbers = #tpu.dot_dimension_numbers<[1], [0], [0], [1], [0, 0, 1, 1], [], []>} : vector<16x32xf32>, vector<32x32xf32>, vector<16x32xf32> -> vector<16x32xf32>
    %c2_23 = arith.constant 2 : index
    %c0_24 = arith.constant 0 : index
    %c0_25 = arith.constant 0 : index
    %23 = vector.load %arg4[%c2_23, %c0_24, %c0_25] : memref<3x1x32xf32, #tpu.memory_space<vmem>>, vector<1x1x32xf32>
    %24 = vector.shape_cast %23 : vector<1x1x32xf32> to vector<1x32xf32>
    %25 = vector.broadcast %24 : vector<1x32xf32> to vector<16x32xf32>
    %26 = arith.addf %22, %25 : vector<16x32xf32>
    %27 = vector.shape_cast %26 : vector<16x32xf32> to vector<8x2x32xf32>
    %c0_26 = arith.constant 0 : index
    %c0_27 = arith.constant 0 : index
    %c0_28 = arith.constant 0 : index
    %28 = vector.load %arg10[%c0_26, %c0_27, %c0_28] : memref<8x2x32xf32, #tpu.memory_space<vmem>>, vector<8x2x32xf32>
    tpu.vector_store %arg10[%c0_26, %c0_27, %c0_28], %27 {strides = array<i32>} : memref<8x2x32xf32, #tpu.memory_space<vmem>>, vector<8x2x32xf32>,
    %c0_29 = arith.constant 0 : index
    %c0_30 = arith.constant 0 : index
    %29 = vector.load %arg1[%c0_29, %c0_30] : memref<2x32xf32, #tpu.memory_space<vmem>>, vector<2x32xf32>
    %c0_i32 = arith.constant 0 : i32
    %c8_i32 = arith.constant 8 : i32
    %30 = arith.addi %c0_i32, %c8_i32 : i32
    %c1_i32 = arith.constant 1 : i32
    %31 = scf.for %arg11 = %c0_i32 to %30 step %c1_i32 iter_args(%arg12 = %29) -> (vector<2x32xf32>)  : i32 {
      %c0_34 = arith.constant 0 : index
      %c0_35 = arith.constant 0 : index
      %c0_36 = arith.constant 0 : index
      %33 = vector.load %arg3[%c0_34, %c0_35, %c0_36] : memref<3x32x32xf32, #tpu.memory_space<vmem>>, vector<1x32x32xf32>
      %34 = vector.shape_cast %33 : vector<1x32x32xf32> to vector<32x32xf32>
      %cst_37 = arith.constant dense<0.000000e+00> : vector<2x32xf32>
      %35 = tpu.matmul %arg12, %34, %cst_37 {dimension_numbers = #tpu.dot_dimension_numbers<[1], [0], [0], [1], [0, 0, 1, 1], [], []>} : vector<2x32xf32>, vector<32x32xf32>, vector<2x32xf32> -> vector<2x32xf32>
      %c0_38 = arith.constant 0 : index
      %c0_39 = arith.constant 0 : index
      %c0_40 = arith.constant 0 : index
      %36 = vector.load %arg5[%c0_38, %c0_39, %c0_40] : memref<3x1x32xf32, #tpu.memory_space<vmem>>, vector<1x1x32xf32>
      %37 = vector.shape_cast %36 : vector<1x1x32xf32> to vector<1x32xf32>
      %38 = vector.broadcast %37 : vector<1x32xf32> to vector<2x32xf32>
      %39 = arith.addf %35, %38 : vector<2x32xf32>
      %c1_41 = arith.constant 1 : index
      %c0_42 = arith.constant 0 : index
      %c0_43 = arith.constant 0 : index
      %40 = vector.load %arg3[%c1_41, %c0_42, %c0_43] : memref<3x32x32xf32, #tpu.memory_space<vmem>>, vector<1x32x32xf32>
      %41 = vector.shape_cast %40 : vector<1x32x32xf32> to vector<32x32xf32>
      %cst_44 = arith.constant dense<0.000000e+00> : vector<2x32xf32>
      %42 = tpu.matmul %arg12, %41, %cst_44 {dimension_numbers = #tpu.dot_dimension_numbers<[1], [0], [0], [1], [0, 0, 1, 1], [], []>} : vector<2x32xf32>, vector<32x32xf32>, vector<2x32xf32> -> vector<2x32xf32>
      %c1_45 = arith.constant 1 : index
      %c0_46 = arith.constant 0 : index
      %c0_47 = arith.constant 0 : index
      %43 = vector.load %arg5[%c1_45, %c0_46, %c0_47] : memref<3x1x32xf32, #tpu.memory_space<vmem>>, vector<1x1x32xf32>
      %44 = vector.shape_cast %43 : vector<1x1x32xf32> to vector<1x32xf32>
      %45 = vector.broadcast %44 : vector<1x32xf32> to vector<2x32xf32>
      %46 = arith.addf %42, %45 : vector<2x32xf32>
      %c2_48 = arith.constant 2 : index
      %c0_49 = arith.constant 0 : index
      %c0_50 = arith.constant 0 : index
      %47 = vector.load %arg3[%c2_48, %c0_49, %c0_50] : memref<3x32x32xf32, #tpu.memory_space<vmem>>, vector<1x32x32xf32>
      %48 = vector.shape_cast %47 : vector<1x32x32xf32> to vector<32x32xf32>
      %cst_51 = arith.constant dense<0.000000e+00> : vector<2x32xf32>
      %49 = tpu.matmul %arg12, %48, %cst_51 {dimension_numbers = #tpu.dot_dimension_numbers<[1], [0], [0], [1], [0, 0, 1, 1], [], []>} : vector<2x32xf32>, vector<32x32xf32>, vector<2x32xf32> -> vector<2x32xf32>
      %c2_52 = arith.constant 2 : index
      %c0_53 = arith.constant 0 : index
      %c0_54 = arith.constant 0 : index
      %50 = vector.load %arg5[%c2_52, %c0_53, %c0_54] : memref<3x1x32xf32, #tpu.memory_space<vmem>>, vector<1x1x32xf32>
      %51 = vector.shape_cast %50 : vector<1x1x32xf32> to vector<1x32xf32>
      %52 = vector.broadcast %51 : vector<1x32xf32> to vector<2x32xf32>
      %53 = arith.addf %49, %52 : vector<2x32xf32>
      %54 = arith.index_cast %arg11 : i32 to index
      %c0_55 = arith.constant 0 : index
      %c0_56 = arith.constant 0 : index
      %55 = vector.load %arg8[%54, %c0_55, %c0_56] : memref<8x2x32xf32, #tpu.memory_space<vmem>>, vector<1x2x32xf32>
      %56 = vector.shape_cast %55 : vector<1x2x32xf32> to vector<2x32xf32>
      %57 = arith.addf %56, %39 : vector<2x32xf32>
      %58 = arith.negf %57 : vector<2x32xf32>
      %59 = math.exp %58 : vector<2x32xf32>
      %cst_57 = arith.constant 1.000000e+00 : f32
      %60 = vector.broadcast %cst_57 : f32 to vector<2x32xf32>
      %61 = arith.addf %60, %59 : vector<2x32xf32>
      %62 = arith.divf %60, %61 : vector<2x32xf32>
      %63 = arith.index_cast %arg11 : i32 to index
      %c0_58 = arith.constant 0 : index
      %c0_59 = arith.constant 0 : index
      %64 = vector.load %arg9[%63, %c0_58, %c0_59] : memref<8x2x32xf32, #tpu.memory_space<vmem>>, vector<1x2x32xf32>
      %65 = vector.shape_cast %64 : vector<1x2x32xf32> to vector<2x32xf32>
      %66 = arith.addf %65, %46 : vector<2x32xf32>
      %67 = arith.negf %66 : vector<2x32xf32>
      %68 = math.exp %67 : vector<2x32xf32>
      %cst_60 = arith.constant 1.000000e+00 : f32
      %69 = vector.broadcast %cst_60 : f32 to vector<2x32xf32>
      %70 = arith.addf %69, %68 : vector<2x32xf32>
      %71 = arith.divf %69, %70 : vector<2x32xf32>
      %72 = arith.index_cast %arg11 : i32 to index
      %c0_61 = arith.constant 0 : index
      %c0_62 = arith.constant 0 : index
      %73 = vector.load %arg10[%72, %c0_61, %c0_62] : memref<8x2x32xf32, #tpu.memory_space<vmem>>, vector<1x2x32xf32>
      %74 = vector.shape_cast %73 : vector<1x2x32xf32> to vector<2x32xf32>
      %75 = arith.mulf %62, %53 : vector<2x32xf32>
      %76 = arith.addf %74, %75 : vector<2x32xf32>
      %77 = math.tanh %76 : vector<2x32xf32>
      %cst_63 = arith.constant 1.000000e+00 : f32
      %78 = vector.broadcast %cst_63 : f32 to vector<2x32xf32>
      %79 = arith.subf %78, %71 : vector<2x32xf32>
      %80 = arith.mulf %79, %77 : vector<2x32xf32>
      %81 = arith.mulf %71, %arg12 : vector<2x32xf32>
      %82 = arith.addf %80, %81 : vector<2x32xf32>
      %83 = arith.index_cast %arg11 : i32 to index
      %c0_64 = arith.constant 0 : index
      %c0_65 = arith.constant 0 : index
      %84 = vector.load %arg6[%83, %c0_64, %c0_65] : memref<8x2x32xf32, #tpu.memory_space<vmem>>, vector<1x2x32xf32>
      %85 = vector.shape_cast %84 : vector<1x2x32xf32> to vector<2x32xf32>
      %86 = vector.shape_cast %82 : vector<2x32xf32> to vector<1x2x32xf32>
      tpu.vector_store %arg6[%83, %c0_64, %c0_65], %86 {strides = array<i32>} : memref<8x2x32xf32, #tpu.memory_space<vmem>>, vector<1x2x32xf32>,
      scf.yield %82 : vector<2x32xf32>
    }
    %c8_i32_31 = arith.constant 8 : i32
    %c0_32 = arith.constant 0 : index
    %c0_33 = arith.constant 0 : index
    %32 = vector.load %arg7[%c0_32, %c0_33] : memref<2x32xf32, #tpu.memory_space<vmem>>, vector<2x32xf32>
    tpu.vector_store %arg7[%c0_32, %c0_33], %31 {strides = array<i32>} : memref<2x32xf32, #tpu.memory_space<vmem>>, vector<2x32xf32>,
    return
  }
}

</mosaic_0001>

<bundles_post_ra>
// kernel: tpu_custom_call.1
= control target key start
LH: loop header
LB: loop body
LE: loop exit
PB: predicated region body
PF: predicated region fallthrough
CT: control target
= control target key end

     0   :  { %13 = vsyncpa [#allocation6], 0  ;;  %s966_s0 = inlined_call_operand.hbm [shape: f32[8,2,32], index: 0, kind: input, shape index: {}]   ;;  %s967_s1 = inlined_call_operand.hbm [shape: f32[2,32], index: 1, kind: input, shape index: {}]   ;;  %s968_s2 = inlined_call_operand.hbm [shape: f32[3,32,32], index: 2, kind: input, shape index: {}]   ;;  %s969_s3 = inlined_call_operand.hbm [shape: f32[3,32,32], index: 3, kind: input, shape index: {}]   ;;  %s970_s4 = inlined_call_operand.vmem [shape: f32[3,1,32], index: 4, kind: input, shape index: {}]   ;;  %s971_s5 = inlined_call_operand.hbm [shape: f32[3,1,32], index: 5, kind: input, shape index: {}]   ;;  %s972_s6 = inlined_call_operand.hbm [shape: f32[8,2,32], index: 6, kind: output, shape index: {0}]   ;;  %s973_s7 = inlined_call_operand.hbm [shape: f32[2,32], index: 7, kind: output, shape index: {1}]  }
   0x1   :  { %14 = vsyncpa [#allocation9], 0 }
   0x2   :  { %15 = vsyncpa [#allocation12], 0 }
   0x3   :  { %16 = vsyncpa [#allocation7], 0  ;;  %s36_s26 = sshll.u32 %s967_s1, 4  ;;  %s37_s26 = int_to_ptr.hbm [resolvable:$true] %s36_s26 }
   0x4   :  { %17 = vsyncpa [#allocation16], 0  ;;  %s813_s27 = smov [#allocation8]   ;;  %s59_s8 = sshll.u32 %s969_s3, 4  ;;  %s60_s8 = int_to_ptr.hbm [resolvable:$true] %s59_s8 }
   0x5   :  { %s38_s28 = sshll.u32 %s813_s27, 4  ;;  %s814_s9 = smov [#allocation11]   ;;  %s39_s28 = int_to_ptr.vmem [resolvable:$true] %s38_s28 }
   0x6   :  { %41 = dma.hbm_to_vmem [thread:$0]  %s37_s26, 32, %s39_s28, [#allocation9]  }
   0x7   :  { %s61_s10 = sshll.u32 %s814_s9, 4  ;;  %s22_s13 = sshll.u32 %s966_s0, 4  ;;  %s62_s10 = int_to_ptr.vmem [resolvable:$true] %s61_s10  ;;  %s23_s13 = int_to_ptr.hbm [resolvable:$true] %s22_s13 }
   0x8   :  { %s815_s1 = smov 128   ;;  %s816_s14 = smov 8  }
   0x9   :  { %67 = dma.hbm_to_vmem [thread:$0]  %s60_s8, 1536, %s62_s10, [#allocation12], %s815_s1, %s815_s1, %s816_s14  }
   0xa   :  { %s817_s15 = smov [#allocation5]   ;;  %s46_s19 = sshll.u32 %s968_s2, 4  ;;  %s47_s19 = int_to_ptr.hbm [resolvable:$true] %s46_s19 }
   0xb   :  { %s24_s16 = sshll.u32 %s817_s15, 4  ;;  %s818_s3 = smov 32   ;;  %s25_s16 = int_to_ptr.vmem [resolvable:$true] %s24_s16 }
   0xc   :  { %s819_s20 = smov 2   ;;  %s820_s0 = smov [#allocation10]  }
   0xd   :  { %30 = dma.hbm_to_vmem [thread:$0]  %s23_s13, 256, %s25_s16, [#allocation6], %s818_s3, %s818_s3, %s819_s20  }
   0xe   :  { %s48_s21 = sshll.u32 %s820_s0, 4  ;;  %s74_s24 = sshll.u32 %s971_s5, 4  ;;  %s49_s21 = int_to_ptr.vmem [resolvable:$true] %s48_s21  ;;  %s75_s24 = int_to_ptr.hbm [resolvable:$true] %s74_s24 }
   0xf   :  { %54 = dma.hbm_to_vmem [thread:$0]  %s47_s19, 1536, %s49_s21, [#allocation9], %s815_s1, %s815_s1, %s816_s14  }
  0x10   :  { %s821_s25 = smov [#allocation13]   ;;  %s822_s2 = smov 16  }
  0x11   :  { %s76_s26 = sshll.u32 %s821_s25, 4  ;;  %s823_s27 = smov 1   ;;  %s77_s26 = int_to_ptr.vmem [resolvable:$true] %s76_s26 }
  0x12   :  { %82 = dma.hbm_to_vmem [thread:$0]  %s75_s24, 48, %s77_s26, [#allocation12], %s822_s2, %s822_s2, %s823_s27  }
  0x13   :  { %795 = dma.done.wait [#allocation6], 256  }
  0x14   :  { %796 = vsyncadd [#allocation6], 4294967040 }
  0x15   :  { %797 = dma.done.wait [#allocation9], 1568  }
  0x16   :  { %798 = vsyncadd [#allocation9], 4294965728 }
  0x17   :  { %799 = dma.done.wait [#allocation12], 1584  }
  0x18   :  { %800 = vsyncadd [#allocation12], 4294965712  ;;  %v884_v0 = vld [vmem:[#allocation8] sm:$0x3]   ;;  %v274_v2 = vld [vmem:[#allocation10 + $0x50] sm:$0xff]  ;;  %vm144_vm0 = vcmask 261120  }
  0x19   :  { %v275_v1 = vld [vmem:[#allocation10 + $0x58] sm:$0xff]  ;;  %v273_v3 = vld [vmem:[#allocation10 + $0x48] sm:$0xff]  ;;  %v272_v5 = vld [vmem:[#allocation10 + $0x40] sm:$0xff]  ;;  %vm186_vm1 = vcmask 254976  }
  0x1a   :  { %314 = vmatpush.msra.mxu2 %v275_v1  ;;  %v199_v4 = vld [vmem:[#allocation10 + $0x38] sm:$0xff]  ;;  %v103_v6 = vld [vmem:[#allocation5] sm:$0x3]  ;;  %v104_v7 = vld [vmem:[#allocation5 + $0x2] sm:$0x3] }
  0x1b   :  { %238 = vmatpush.msra.mxu1 %v199_v4  ;;  %v105_v8 = vld [vmem:[#allocation5 + $0x4] sm:$0x3]  ;;  %v106_v9 = vld [vmem:[#allocation5 + $0x6] sm:$0x3]  ;;  %127 = vst [vmem:[#allocation1] ss:$4 sm:$0xff] %v103_v6 }
  0x1c   :  { %315 = vmatpush.msra.mxu2 %v274_v2  ;;  %v107_v10 = vld [vmem:[#allocation5 + $0x8] sm:$0x3]  ;;  %129 = vst [vmem:[#allocation1 + $0x1] ss:$4 sm:$0xff] %v104_v7  ;;  %v114_v11 = vld [vmem:[#allocation10 + $0x18] sm:$0xff]  ;;  %v197_v14 = vld [vmem:[#allocation10 + $0x28] sm:$0xff] }
  0x1d   :  { %v198_v12 = vld [vmem:[#allocation10 + $0x30] sm:$0xff]  ;;  %131 = vst [vmem:[#allocation1 + $0x2] ss:$4 sm:$0xff] %v105_v8  ;;  %570 = vmatpush.msra.mxu3 %v114_v11  ;;  %v112_v15 = vld [vmem:[#allocation10 + $0x8] sm:$0xff]  ;;  %v196_v16 = vld [vmem:[#allocation10 + $0x20] sm:$0xff]  ;;  %161 = vmatpush.msra.mxu0 %v114_v11 }
  0x1e   :  { %v113_v13 = vld [vmem:[#allocation10 + $0x10] sm:$0xff]  ;;  %316 = vmatpush.msra.mxu2 %v273_v3  ;;  %133 = vst [vmem:[#allocation1 + $0x3] ss:$4 sm:$0xff] %v106_v9  ;;  %239 = vmatpush.msra.mxu1 %v198_v12  ;;  %v111_v17 = vld [vmem:[#allocation10] sm:$0xff]  ;;  %v108_v18 = vld [vmem:[#allocation5 + $0xa] sm:$0x3] }
  0x1f   :  { %571 = vmatpush.msra.mxu3 %v113_v13  ;;  %v109_v19 = vld [vmem:[#allocation5 + $0xc] sm:$0x3]  ;;  %v110_v20 = vld [vmem:[#allocation5 + $0xe] sm:$0x3]  ;;  %135 = vst [vmem:[#allocation1 + $0x20] ss:$4 sm:$0xff] %v107_v10  ;;  %162 = vmatpush.msra.mxu0 %v113_v13 }
  0x20   :  { %317 = vmatpush.msra.mxu2 %v272_v5  ;;  %240 = vmatpush.msra.mxu1 %v197_v14  ;;  %137 = vst [vmem:[#allocation1 + $0x21] ss:$4 sm:$0xff] %v108_v18  ;;  %v605_v27 = vld [vmem:[%s970_s4] ss:$0 sm:$0xff]  ;;  %v603_v33 = vld [vmem:[%s970_s4 + $0x1] ss:$0 sm:$0xff] }
  0x21   :  { %572 = vmatpush.msra.mxu3 %v112_v15  ;;  %139 = vst [vmem:[#allocation1 + $0x22] ss:$4 sm:$0xff] %v109_v19  ;;  %163 = vmatpush.msra.mxu0 %v112_v15  ;;  %v604_v49 = vld [vmem:[%s970_s4 + $0x2] ss:$0 sm:$0xff]  ;;  %s928_s4 = smov 0  }
  0x22   :  { %241 = vmatpush.msra.mxu1 %v196_v16  ;;  %141 = vst [vmem:[#allocation1 + $0x23] ss:$4 sm:$0xff] %v110_v20 }
  0x23   :  { %573 = vmatpush.msra.mxu3 %v111_v17  ;;  %164 = vmatpush.msra.mxu0 %v111_v17 }
  0x25   :  { %v142_v21 = vld.sshfl [vmem:[#allocation1] sm:$0xff pattern:$0x73625140] }
  0x26   :  { %205 = vst [vmem:[#allocation1] ss:$4 sm:$0xff] %v103_v6  ;;  %556 = vmatmul.msk.f32.vlgmr.msra.gmra.mxu0 %vm144_vm0, %v142_v21 }
  0x27   :  { %207 = vst [vmem:[#allocation1 + $0x1] ss:$4 sm:$0xff] %v104_v7 }
  0x28   :  { %209 = vst [vmem:[#allocation1 + $0x2] ss:$4 sm:$0xff] %v105_v8 }
  0x29   :  { %211 = vst [vmem:[#allocation1 + $0x3] ss:$4 sm:$0xff] %v106_v9  ;;  %v143_v22 = vld.sshfl [vmem:[#allocation1 + $0x20] sm:$0xff pattern:$0x73625140] }
  0x2a   :  { %557 = vmatmul.msk.f32.vlgmr.msra.gmra.mxu3 %vm144_vm0, %v143_v22  ;;  %213 = vst [vmem:[#allocation1 + $0x20] ss:$4 sm:$0xff] %v107_v10 }
  0x2b   :  { %215 = vst [vmem:[#allocation1 + $0x21] ss:$4 sm:$0xff] %v108_v18 }
  0x2c   :  { %217 = vst [vmem:[#allocation1 + $0x22] ss:$4 sm:$0xff] %v109_v19 }
  0x2d   :  { %219 = vst [vmem:[#allocation1 + $0x23] ss:$4 sm:$0xff] %v110_v20 }
  0x30   :  { %v220_v23 = vld.sshfl [vmem:[#allocation1] sm:$0xff pattern:$0x73625140] }
  0x31   :  { %281 = vst [vmem:[#allocation1] ss:$4 sm:$0xff] %v103_v6  ;;  %559 = vmatmul.msk.f32.vlgmr.msra.gmra.mxu1 %vm144_vm0, %v220_v23 }
  0x32   :  { %283 = vst [vmem:[#allocation1 + $0x1] ss:$4 sm:$0xff] %v104_v7 }
  0x33   :  { %285 = vst [vmem:[#allocation1 + $0x2] ss:$4 sm:$0xff] %v105_v8 }
  0x34   :  { %287 = vst [vmem:[#allocation1 + $0x3] ss:$4 sm:$0xff] %v106_v9  ;;  %v221_v24 = vld.sshfl [vmem:[#allocation1 + $0x20] sm:$0xff pattern:$0x73625140] }
  0x35   :  { %289 = vst [vmem:[#allocation1 + $0x20] ss:$4 sm:$0xff] %v107_v10 }
  0x36   :  { %291 = vst [vmem:[#allocation1 + $0x21] ss:$4 sm:$0xff] %v108_v18 }
  0x37   :  { %293 = vst [vmem:[#allocation1 + $0x22] ss:$4 sm:$0xff] %v109_v19 }
  0x38   :  { %295 = vst [vmem:[#allocation1 + $0x23] ss:$4 sm:$0xff] %v110_v20 }
  0x39   :  { %560 = vmatmul.msk.f32.gmra.mxu1 %vm144_vm0, %v221_v24 }
  0x3b   :  { %v296_v25 = vld.sshfl [vmem:[#allocation1] sm:$0xff pattern:$0x73625140] }
  0x3c   :  { %562 = vmatmul.msk.f32.vlgmr.msra.gmra.mxu2 %vm144_vm0, %v296_v25 }
  0x3f   :  { %v297_v26 = vld.sshfl [vmem:[#allocation1 + $0x20] sm:$0xff pattern:$0x73625140] }
  0x44   :  { %563 = vmatmul.msk.f32.gmra.mxu2 %vm144_vm0, %v297_v26 }
  0xa3   :  { %v166_v28 = vpop.f32.mrf.mxu0 }
  0xa4   :  { %v167_v29 = vadd.f32 %v605_v27, %v166_v28 }
  0xa6   :  { %v174_v30 = vrot.slane %v167_v29, 2  ;;  %v175_v31 = vrot.slane %v167_v29, 4  ;;  %v176_v32 = vrot.slane %v167_v29, 6  ;;  %187 = vst.msk [vmem:[#allocation2] sm:$0x3] %vm186_vm1, %v167_v29 }
  0xa8   :  { %188 = vst.msk [vmem:[#allocation2 + $0x2] sm:$0x3] %vm186_vm1, %v174_v30 }
  0xa9   :  { %189 = vst.msk [vmem:[#allocation2 + $0x4] sm:$0x3] %vm186_vm1, %v175_v31 }
  0xaa   :  { %190 = vst.msk [vmem:[#allocation2 + $0x6] sm:$0x3] %vm186_vm1, %v176_v32 }
  0xad   :  { %v169_v34 = vpop.f32.mrf.mxu3 }
  0xae   :  { %v243_v35 = vpop.f32.mrf.mxu1  ;;  %v170_v36 = vadd.f32 %v605_v27, %v169_v34 }
  0xaf   :  { %v244_v37 = vadd.f32 %v603_v33, %v243_v35 }
  0xb0   :  { %v177_v38 = vrot.slane %v170_v36, 2  ;;  %191 = vst.msk [vmem:[#allocation2 + $0x8] sm:$0x3] %vm186_vm1, %v170_v36  ;;  %v178_v42 = vrot.slane %v170_v36, 4  ;;  %v179_v43 = vrot.slane %v170_v36, 6 }
  0xb1   :  { %v251_v39 = vrot.slane %v244_v37, 2  ;;  %v252_v40 = vrot.slane %v244_v37, 4  ;;  %v253_v41 = vrot.slane %v244_v37, 6  ;;  %263 = vst.msk [vmem:[#allocation3] sm:$0x3] %vm186_vm1, %v244_v37 }
  0xb2   :  { %192 = vst.msk [vmem:[#allocation2 + $0xa] sm:$0x3] %vm186_vm1, %v177_v38 }
  0xb3   :  { %264 = vst.msk [vmem:[#allocation3 + $0x2] sm:$0x3] %vm186_vm1, %v251_v39 }
  0xb4   :  { %265 = vst.msk [vmem:[#allocation3 + $0x4] sm:$0x3] %vm186_vm1, %v252_v40 }
  0xb5   :  { %266 = vst.msk [vmem:[#allocation3 + $0x6] sm:$0x3] %vm186_vm1, %v253_v41 }
  0xb6   :  { %193 = vst.msk [vmem:[#allocation2 + $0xc] sm:$0x3] %vm186_vm1, %v178_v42  ;;  %v246_v44 = vpop.f32.mrf.mxu1 }
  0xb7   :  { %194 = vst.msk [vmem:[#allocation2 + $0xe] sm:$0x3] %vm186_vm1, %v179_v43  ;;  %v247_v45 = vadd.f32 %v603_v33, %v246_v44 }
  0xb9   :  { %v254_v46 = vrot.slane %v247_v45, 2  ;;  %v255_v47 = vrot.slane %v247_v45, 4  ;;  %v256_v48 = vrot.slane %v247_v45, 6  ;;  %267 = vst.msk [vmem:[#allocation3 + $0x8] sm:$0x3] %vm186_vm1, %v247_v45 }
  0xbb   :  { %268 = vst.msk [vmem:[#allocation3 + $0xa] sm:$0x3] %vm186_vm1, %v254_v46 }
  0xbc   :  { %269 = vst.msk [vmem:[#allocation3 + $0xc] sm:$0x3] %vm186_vm1, %v255_v47 }
  0xbd   :  { %270 = vst.msk [vmem:[#allocation3 + $0xe] sm:$0x3] %vm186_vm1, %v256_v48 }
  0xbf   :  { %v319_v50 = vpop.f32.mrf.mxu2 }
  0xc0   :  { %v320_v51 = vadd.f32 %v604_v49, %v319_v50 }
  0xc2   :  { %v327_v52 = vrot.slane %v320_v51, 2  ;;  %v328_v53 = vrot.slane %v320_v51, 4  ;;  %v329_v54 = vrot.slane %v320_v51, 6  ;;  %339 = vst.msk [vmem:[#allocation4] sm:$0x3] %vm186_vm1, %v320_v51 }
  0xc4   :  { %340 = vst.msk [vmem:[#allocation4 + $0x2] sm:$0x3] %vm186_vm1, %v327_v52 }
  0xc5   :  { %341 = vst.msk [vmem:[#allocation4 + $0x4] sm:$0x3] %vm186_vm1, %v328_v53 }
  0xc6   :  { %342 = vst.msk [vmem:[#allocation4 + $0x6] sm:$0x3] %vm186_vm1, %v329_v54 }
  0xc7   :  { %v322_v55 = vpop.f32.mrf.mxu2 }
  0xc8   :  { %v323_v56 = vadd.f32 %v604_v49, %v322_v55 }
  0xca   :  { %v330_v57 = vrot.slane %v323_v56, 2  ;;  %v331_v58 = vrot.slane %v323_v56, 4  ;;  %v332_v59 = vrot.slane %v323_v56, 6  ;;  %343 = vst.msk [vmem:[#allocation4 + $0x8] sm:$0x3] %vm186_vm1, %v323_v56 }
  0xcc   :  { %344 = vst.msk [vmem:[#allocation4 + $0xa] sm:$0x3] %vm186_vm1, %v330_v57 }
  0xcd   :  { %345 = vst.msk [vmem:[#allocation4 + $0xc] sm:$0x3] %vm186_vm1, %v331_v58 }
  0xce   :  { %346 = vst.msk [vmem:[#allocation4 + $0xe] sm:$0x3] %vm186_vm1, %v332_v59 }
  0xcf LB: > { %v358_v60 = vld [vmem:[#allocation11 + $0x18] sm:$0xff]  ;;  %v357_v62 = vld [vmem:[#allocation11 + $0x10] sm:$0xff]  ;;  %v356_v1 = vld [vmem:[#allocation11 + $0x8] sm:$0xff]  ;;  %s943_s10 = sshll.u32 %s811_s4, 1  ;;  %s353_s4 = sadd.s32 1, %s811_s4   ;;  %s811_s4 = sphi %s928_s4, %s353_s4   ;;  %v807_v0 = vphi %v884_v0, %v974_v0  }
  0xd0   : > { %v390_v61 = vld [vmem:[#allocation11 + $0x38] sm:$0xff]  ;;  %378 = vmatpush.msra.mxu0 %v358_v60  ;;  %v389_v63 = vld [vmem:[#allocation11 + $0x30] sm:$0xff]  ;;  %v388_v2 = vld [vmem:[#allocation11 + $0x28] sm:$0xff]  ;;  %s447_s11 = scalar_lea.vmem [#allocation2], %s943_s10  ;;  %s469_s12 = scalar_lea.vmem [#allocation3], %s943_s10 }
  0xd1   : > { %408 = vmatpush.msra.mxu1 %v390_v61  ;;  %v420_v3 = vld [vmem:[#allocation11 + $0x58] sm:$0xff]  ;;  %v355_v4 = vld [vmem:[#allocation11] sm:$0xff]  ;;  %v419_v5 = vld [vmem:[#allocation11 + $0x50] sm:$0xff]  ;;  %s491_s13 = scalar_lea.vmem [#allocation4], %s943_s10  ;;  %s500_s1 = scalar_lea.vmem [#allocation14], %s943_s10 }
  0xd2   : > { %379 = vmatpush.msra.mxu0 %v357_v62  ;;  %v387_v6 = vld [vmem:[#allocation11 + $0x20] sm:$0xff]  ;;  %438 = vmatpush.msra.mxu2 %v420_v3  ;;  %v418_v7 = vld [vmem:[#allocation11 + $0x48] sm:$0xff]  ;;  %v448_v12 = vld [vmem:[%s447_s11] sm:$0x3]  ;;  %p350_p0 = scmp.ge.s32.totalorder %s353_s4, 8  }
  0xd3   : > { %409 = vmatpush.msra.mxu1 %v389_v63  ;;  %v417_v8 = vld [vmem:[#allocation11 + $0x40] sm:$0xff]  ;;  %v470_v14 = vld [vmem:[%s469_s12] sm:$0x3]  ;;  %s509_s16 = sshll.u32 (%p350_p0), %s972_s6, 4  ;;  %s824_s17 = smov (%p350_p0), [#allocation14]   ;;  %s510_s16 = int_to_ptr.hbm [resolvable:$true] %s509_s16 }
  0xd4   : > { %380 = vmatpush.msra.mxu0 %v356_v1  ;;  %439 = vmatpush.msra.mxu2 %v419_v5  ;;  %v606_v9 = vld [vmem:[#allocation13] ss:$0 sm:$0xff]  ;;  %v607_v10 = vld [vmem:[#allocation13 + $0x1] ss:$0 sm:$0xff]  ;;  %v608_v29 = vld [vmem:[#allocation13 + $0x2] ss:$0 sm:$0xff] }
  0xd5   : > { %410 = vmatpush.msra.mxu1 %v388_v2  ;;  %v492_v43 = vld [vmem:[%s491_s13] sm:$0x3]  ;;  %s507_s18 = sshll.u32 (%p350_p0), %s824_s17, 4  ;;  %s825_s19 = smov (%p350_p0), [#allocation15]   ;;  %s508_s18 = int_to_ptr.vmem [resolvable:$true] %s507_s18 }
  0xd6   : > { %381 = vmatpush.msra.mxu0 %v355_v4  ;;  %440 = vmatpush.msra.mxu2 %v418_v7  ;;  %s521_s0 = sshll.u32 (%p350_p0), %s825_s19, 4  ;;  %s523_s23 = sshll.u32 (%p350_p0), %s973_s7, 4  ;;  %s522_s0 = int_to_ptr.vmem [resolvable:$true] %s521_s0  ;;  %s524_s23 = int_to_ptr.hbm [resolvable:$true] %s523_s23 }
  0xd7   : > { %411 = vmatpush.msra.mxu1 %v387_v6  ;;  %564 = vmatmul.msk.f32.vlgmr.msra.gmra.mxu0 %vm144_vm0, %v807_v0 }
  0xd8   : > { %565 = vmatmul.msk.f32.vlgmr.msra.gmra.mxu1 %vm144_vm0, %v807_v0  ;;  %441 = vmatpush.msra.mxu2 %v417_v8 }
  0xd9   : > { %566 = vmatmul.msk.f32.vlgmr.msra.gmra.mxu2 %vm144_vm0, %v807_v0 }
 0x154   : > { %v383_v11 = vpop.f32.mrf.mxu0 }
 0x155   : > { %v413_v13 = vpop.f32.mrf.mxu1  ;;  %v384_v15 = vadd.f32 %v606_v9, %v383_v11 }
 0x156   : > { %v414_v16 = vadd.f32 %v607_v10, %v413_v13 }
 0x157   : > { %v449_v17 = vadd.f32 %v448_v12, %v384_v15 }
 0x158   : > { %v471_v18 = vadd.f32 %v470_v14, %v414_v16 }
 0x159   : > { %v568_v19 = vmul.f32 -1.442695, %v449_v17 }
 0x15a   : > { %v569_v20 = vmul.f32 -1.442695, %v471_v18 }
 0x15b   : > { %609 = vpow2.f32 %v568_v19 }
 0x15c   : > { %611 = vpow2.f32 %v569_v20  ;;  %v443_v32 = vpop.f32.mrf.mxu2 }
 0x15d   : > { %v444_v37 = vadd.f32 %v608_v29, %v443_v32 }
 0x161   : > { %v610_v21 = vpop.eup %609 }
 0x162   : > { %v612_v22 = vpop.eup %611  ;;  %v453_v23 = vadd.f32 1.0, %v610_v21 }
 0x163   : > { %v475_v24 = vadd.f32 1.0, %v612_v22 }
 0x164   : > { %613 = vrcp.f32 %v453_v23  ;;  %v465_v33 = vand.u32 2147483648, %v453_v23  ;;  %v463_v35 = vand.u32 2147483647, %v453_v23  ;;  %vm459_vm3 = vweird.f32 %v453_v23 }
 0x165   : > { %615 = vrcp.f32 %v475_v24  ;;  %vm481_vm6 = vweird.f32 %v475_v24  ;;  %v487_v44 = vand.u32 2147483648, %v475_v24  ;;  %v485_v46 = vand.u32 2147483647, %v475_v24 }
 0x166   : > { %v466_v39 = vor.u32 1.1754944e-38, %v465_v33  ;;  %vm464_vm5 = vcmp.eq.f32.partialorder %v463_v35, 8.507059e+37 }
 0x167   : > { %v488_v49 = vor.u32 1.1754944e-38, %v487_v44  ;;  %vm486_vm9 = vcmp.eq.f32.partialorder %v485_v46, 8.507059e+37 }
 0x16a   : > { %v614_v25 = vpop.eup %613 }
 0x16b   : > { %v616_v26 = vpop.eup %615  ;;  %v455_v27 = vmul.f32 %v614_v25, %v453_v23  ;;  %vm460_vm2 = vweird.f32 %v614_v25 }
 0x16c   : > { %v477_v28 = vmul.f32 %v616_v26, %v475_v24  ;;  %vm461_vm4 = vmor %vm459_vm3, %vm460_vm2  ;;  %vm482_vm7 = vweird.f32 %v616_v26 }
 0x16d   : > { %v456_v30 = vsub.f32 1.0, %v455_v27  ;;  %vm483_vm8 = vmor %vm481_vm6, %vm482_vm7 }
 0x16e   : > { %v478_v31 = vsub.f32 1.0, %v477_v28 }
 0x16f   : > { %v457_v34 = vmul.f32 %v614_v25, %v456_v30 }
 0x170   : > { %v479_v36 = vmul.f32 %v616_v26, %v478_v31 }
 0x171   : > { %v458_v38 = vadd.f32 %v614_v25, %v457_v34 }
 0x172   : > { %v480_v42 = vadd.f32 %v616_v26, %v479_v36 }
 0x173   : > { %v462_v40 = vsel %vm461_vm4, %v614_v25, %v458_v38 }
 0x174   : > { %v467_v41 = vsel %vm464_vm5, %v466_v39, %v462_v40  ;;  %v484_v48 = vsel %vm483_vm8, %v616_v26, %v480_v42 }
 0x175   : > { %v493_v45 = vmul.f32 %v467_v41, %v444_v37  ;;  %v489_v50 = vsel %vm486_vm9, %v488_v49, %v484_v48 }
 0x176   : > { %v496_v51 = vsub.f32 1.0, %v489_v50  ;;  %v498_v54 = vmul.f32 %v807_v0, %v489_v50 }
 0x177   : > { %v494_v47 = vadd.f32 %v493_v45, %v492_v43 }
 0x179   : > { %617 = vtanh.f32 %v494_v47 }
 0x17f   : > { %v618_v52 = vpop.eup %617 }
 0x180   : > { %v497_v53 = vmul.f32 %v618_v52, %v496_v51  ;;  %352 = sbr.rel (!%p350_p0) target bundleno = 207 (0xcf), region = 112 }
 0x182   : > { %v499_v55 = vadd.f32 %v498_v54, %v497_v53  }
 0x184   : > { %501 = vst.msk [vmem:[%s500_s1] sm:$0x3] %vm186_vm1, %v499_v55  ;;  %v974_v0 = vmov %v499_v55 }
 0x185   :  { %502 = vst.msk [vmem:[#allocation15] sm:$0x3] %vm186_vm1, %v499_v55  ;;  %515 = dma.vmem_to_hbm [thread:$0]  %s508_s18, 256, %s510_s16, [#allocation7], %s818_s3, %s818_s3, %s819_s20  }
 0x186   :  { %526 = dma.vmem_to_hbm [thread:$0]  %s522_s0, 32, %s524_s23, [#allocation16]  }
 0x187   :  { %801 = dma.done.wait [#allocation7], 256  }
 0x188   :  { %802 = vsyncadd [#allocation7], 4294967040 }
 0x189   :  { %803 = dma.done.wait [#allocation16], 32  }
 0x18a   :  { %804 = vsyncadd [#allocation16], 4294967264 }
 0x18b   :  { %535 = vsyncpa [#allocation6], 1 }
 0x18c   :  { %536 = vsyncpa [#allocation9], 1 }
 0x18d   :  { %537 = vsyncpa [#allocation12], 1 }
 0x18e   :  { %538 = vsyncpa [#allocation7], 1 }
 0x18f   :  { %539 = vsyncpa [#allocation16], 1 }

</bundles_post_ra>
